<compile_context>
chip_gen: v7x
topology: tpu7x:2x2x1
jax: 0.10.0
libtpu: 0.0.40
codegen_flags: <defaults>
</compile_context>

<pallas_src>
import functools

import jax
import jax.numpy as jnp
from jax.experimental import pallas as pl
from jax.experimental.pallas import tpu as pltpu


def _dcae_fused_kernel(xp_ref, w_ref, b_ref, o_ref, *, padded_w: int):
    """Fused 3x3 conv (+bias) + channel-group-average shortcut.

    xp_ref: (C_in, P)        zero-padded input, spatial flattened, P=(H+3)*(W+2)
    w_ref : (9, C_out, C_in) per-tap weight matrices (shortcut folded into tap 4)
    b_ref : (C_out, 1)       conv bias
    o_ref : (C_out, L)       L = H*(W+2); wrapper crops the 2 junk columns/row
    """
    c_out, out_len = o_ref.shape
    acc = jnp.zeros((c_out, out_len), jnp.float32)
    for ky in range(3):
        for kx in range(3):
            tap = ky * 3 + kx
            shift = ky * padded_w + kx
            # Shifted (lane-offset) view of the padded input: (C_in, L).
            xs = xp_ref[:, pl.ds(shift, out_len)]
            acc = acc + jnp.dot(w_ref[tap], xs,
                                preferred_element_type=jnp.float32)
    o_ref[...] = (acc + b_ref[...]).astype(o_ref.dtype)


def dcae_channel_downsample(x, conv_weight, conv_bias, *, downsample_factor):
    """x: (B, C_in, H, W); conv_weight: (C_out, C_in, 3, 3); conv_bias: (C_out,)."""
    B, c_in, H, W = x.shape
    assert c_in % downsample_factor == 0
    c_out = c_in // downsample_factor
    assert c_in % c_out == 0                      # PixelUnshuffle layer contract (factor=1)
    group_size = c_in // c_out

    wp = W + 2                                    # padded row width == flat lane stride
    P = (H + 3) * wp                              # top pad 1, bottom pad 2 keeps all taps in-bounds
    L = H * wp                                    # kernel computes wp-wide rows; cropped to W below

    # Zero-pad (top=1, bottom=2, left=1, right=1) and flatten the spatial dims so
    # the last (lane) axis is the full padded H*W extent.
    xp = jnp.pad(x, ((0, 0), (0, 0), (1, 2), (1, 1))).reshape(B, c_in, P)

    # Per-tap (C_out, C_in) matrices; fold the channel-averaging shortcut into the
    # center tap so conv + shortcut is a single sum of 9 matmuls.
    wmat = jnp.transpose(conv_weight, (2, 3, 0, 1)).reshape(9, c_out, c_in)
    avg = jnp.repeat(jnp.eye(c_out, dtype=wmat.dtype), group_size, axis=1) / group_size
    wmat = wmat.at[4].add(avg)
    bias2d = conv_bias.reshape(c_out, 1).astype(jnp.float32)

    itemsize = jnp.dtype(x.dtype).itemsize
    flops = 2 * B * c_out * c_in * 9 * L
    bytes_accessed = (B * c_in * P * itemsize
                      + 9 * c_out * c_in * 4 + c_out * 4
                      + B * c_out * L * itemsize)

    out_flat = pl.pallas_call(
        functools.partial(_dcae_fused_kernel, padded_w=wp),
        out_shape=jax.ShapeDtypeStruct((B, c_out, L), x.dtype),
        grid=(B,),
        in_specs=[
            pl.BlockSpec((None, c_in, P), lambda b: (b, 0, 0)),       # whole image / batch elem
            pl.BlockSpec((9, c_out, c_in), lambda b: (0, 0, 0)),      # weights stay resident
            pl.BlockSpec((c_out, 1), lambda b: (0, 0)),               # bias stays resident
        ],
        out_specs=pl.BlockSpec((None, c_out, L), lambda b: (b, 0, 0)),
        compiler_params=pltpu.CompilerParams(
            dimension_semantics=("parallel",),
            vmem_limit_bytes=48 * 1024 * 1024,
        ),
        cost_estimate=pl.CostEstimate(
            flops=flops, transcendentals=0, bytes_accessed=bytes_accessed),
    )(xp, wmat, bias2d)

    # Crop the 2 junk columns of each computed row: (B, C_out, H*(W+2)) -> (B, C_out, H, W).
    return out_flat.reshape(B, c_out, H, wp)[:, :, :, :W]


if __name__ == "__main__":
    # DCAE_ChannelDownsampleLayer(in_channels=4, downsample_factor=2)
    B, in_channels, H, W = 2, 4, 16, 16
    downsample_factor = 2
    out_channels = in_channels // downsample_factor
    group_size = in_channels // out_channels

    key = jax.random.PRNGKey(0)
    kx, kw, kb = jax.random.split(key, 3)
    x = jax.random.normal(kx, (B, in_channels, H, W), dtype=jnp.float32)
    conv_weight = 0.1 * jax.random.normal(kw, (out_channels, in_channels, 3, 3), dtype=jnp.float32)
    conv_bias = 0.1 * jax.random.normal(kb, (out_channels,), dtype=jnp.float32)

    out = dcae_channel_downsample(
        x, conv_weight, conv_bias, downsample_factor=downsample_factor)
    out = jax.block_until_ready(out)

    # Pure-JAX reference: conv(x) + channel-group mean shortcut.
    ref_conv = jax.lax.conv_general_dilated(
        x, conv_weight, window_strides=(1, 1), padding=((1, 1), (1, 1)),
        dimension_numbers=("NCHW", "OIHW", "NCHW"),
        precision=jax.lax.Precision.HIGHEST,
    ) + conv_bias.reshape(1, out_channels, 1, 1)
    ref_shortcut = jnp.mean(x.reshape(B, out_channels, group_size, H, W), axis=2)
    ref = ref_conv + ref_shortcut

    assert out.shape == (B, out_channels, H, W)
    # Tolerance covers MXU-matmul vs XLA-conv accumulation-order/precision differences.
    assert jnp.allclose(out, ref, atol=1e-2, rtol=1e-2), float(jnp.max(jnp.abs(out - ref)))

    print("KERNEL_OK")
</pallas_src>

<mosaic_0001>
module attributes {stable_mosaic.version = 11 : i64} {
  func.func @_dcae_fused_kernel(%arg0: i32, %arg1: memref<1x4x342xf32, #tpu.memory_space<vmem>>, %arg2: memref<9x2x4xf32, #tpu.memory_space<vmem>>, %arg3: memref<2x1xf32, #tpu.memory_space<vmem>>, %arg4: memref<1x2x288xf32, #tpu.memory_space<vmem>>) attributes {dimension_semantics = [#tpu.dimension_semantics<parallel>], iteration_bounds = array<i64: 2>, scalar_prefetch = 0 : i64, scratch_operands = 0 : i64, tpu.core_type = #tpu.core_type<tc>, window_params = [{transform_indices = @transform_0, window_bounds = array<i64: 1, 4, 342>}, {pipeline_mode = #tpu.pipeline_mode<synchronous>, transform_indices = @transform_1, window_bounds = array<i64: 9, 2, 4>}, {pipeline_mode = #tpu.pipeline_mode<synchronous>, transform_indices = @transform_2, window_bounds = array<i64: 2, 1>}, {transform_indices = @transform_3, window_bounds = array<i64: 1, 2, 288>}]} {
    %cst = arith.constant 0.000000e+00 : f32
    %0 = vector.broadcast %cst : f32 to vector<2x288xf32>
    %c0 = arith.constant 0 : index
    %c0_0 = arith.constant 0 : index
    %c0_1 = arith.constant 0 : index
    %1 = vector.load %arg1[%c0, %c0_0, %c0_1] : memref<1x4x342xf32, #tpu.memory_space<vmem>>, vector<1x4x288xf32>
    %2 = vector.shape_cast %1 : vector<1x4x288xf32> to vector<4x288xf32>
    %c0_2 = arith.constant 0 : index
    %c0_3 = arith.constant 0 : index
    %c0_4 = arith.constant 0 : index
    %3 = vector.load %arg2[%c0_2, %c0_3, %c0_4] : memref<9x2x4xf32, #tpu.memory_space<vmem>>, vector<1x2x4xf32>
    %4 = vector.shape_cast %3 : vector<1x2x4xf32> to vector<2x4xf32>
    %cst_5 = arith.constant dense<0.000000e+00> : vector<2x288xf32>
    %5 = tpu.matmul %4, %2, %cst_5 {dimension_numbers = #tpu.dot_dimension_numbers<[1], [0], [0], [1], [0, 0, 1, 1], [], []>} : vector<2x4xf32>, vector<4x288xf32>, vector<2x288xf32> -> vector<2x288xf32>
    %6 = arith.addf %0, %5 : vector<2x288xf32>
    %c0_6 = arith.constant 0 : index
    %c0_7 = arith.constant 0 : index
    %c1 = arith.constant 1 : index
    %7 = vector.load %arg1[%c0_6, %c0_7, %c1] : memref<1x4x342xf32, #tpu.memory_space<vmem>>, vector<1x4x288xf32>
    %8 = vector.shape_cast %7 : vector<1x4x288xf32> to vector<4x288xf32>
    %c1_8 = arith.constant 1 : index
    %c0_9 = arith.constant 0 : index
    %c0_10 = arith.constant 0 : index
    %9 = vector.load %arg2[%c1_8, %c0_9, %c0_10] : memref<9x2x4xf32, #tpu.memory_space<vmem>>, vector<1x2x4xf32>
    %10 = vector.shape_cast %9 : vector<1x2x4xf32> to vector<2x4xf32>
    %cst_11 = arith.constant dense<0.000000e+00> : vector<2x288xf32>
    %11 = tpu.matmul %10, %8, %cst_11 {dimension_numbers = #tpu.dot_dimension_numbers<[1], [0], [0], [1], [0, 0, 1, 1], [], []>} : vector<2x4xf32>, vector<4x288xf32>, vector<2x288xf32> -> vector<2x288xf32>
    %12 = arith.addf %6, %11 : vector<2x288xf32>
    %c0_12 = arith.constant 0 : index
    %c0_13 = arith.constant 0 : index
    %c2 = arith.constant 2 : index
    %13 = vector.load %arg1[%c0_12, %c0_13, %c2] : memref<1x4x342xf32, #tpu.memory_space<vmem>>, vector<1x4x288xf32>
    %14 = vector.shape_cast %13 : vector<1x4x288xf32> to vector<4x288xf32>
    %c2_14 = arith.constant 2 : index
    %c0_15 = arith.constant 0 : index
    %c0_16 = arith.constant 0 : index
    %15 = vector.load %arg2[%c2_14, %c0_15, %c0_16] : memref<9x2x4xf32, #tpu.memory_space<vmem>>, vector<1x2x4xf32>
    %16 = vector.shape_cast %15 : vector<1x2x4xf32> to vector<2x4xf32>
    %cst_17 = arith.constant dense<0.000000e+00> : vector<2x288xf32>
    %17 = tpu.matmul %16, %14, %cst_17 {dimension_numbers = #tpu.dot_dimension_numbers<[1], [0], [0], [1], [0, 0, 1, 1], [], []>} : vector<2x4xf32>, vector<4x288xf32>, vector<2x288xf32> -> vector<2x288xf32>
    %18 = arith.addf %12, %17 : vector<2x288xf32>
    %c0_18 = arith.constant 0 : index
    %c0_19 = arith.constant 0 : index
    %c18 = arith.constant 18 : index
    %19 = vector.load %arg1[%c0_18, %c0_19, %c18] : memref<1x4x342xf32, #tpu.memory_space<vmem>>, vector<1x4x288xf32>
    %20 = vector.shape_cast %19 : vector<1x4x288xf32> to vector<4x288xf32>
    %c3 = arith.constant 3 : index
    %c0_20 = arith.constant 0 : index
    %c0_21 = arith.constant 0 : index
    %21 = vector.load %arg2[%c3, %c0_20, %c0_21] : memref<9x2x4xf32, #tpu.memory_space<vmem>>, vector<1x2x4xf32>
    %22 = vector.shape_cast %21 : vector<1x2x4xf32> to vector<2x4xf32>
    %cst_22 = arith.constant dense<0.000000e+00> : vector<2x288xf32>
    %23 = tpu.matmul %22, %20, %cst_22 {dimension_numbers = #tpu.dot_dimension_numbers<[1], [0], [0], [1], [0, 0, 1, 1], [], []>} : vector<2x4xf32>, vector<4x288xf32>, vector<2x288xf32> -> vector<2x288xf32>
    %24 = arith.addf %18, %23 : vector<2x288xf32>
    %c0_23 = arith.constant 0 : index
    %c0_24 = arith.constant 0 : index
    %c19 = arith.constant 19 : index
    %25 = vector.load %arg1[%c0_23, %c0_24, %c19] : memref<1x4x342xf32, #tpu.memory_space<vmem>>, vector<1x4x288xf32>
    %26 = vector.shape_cast %25 : vector<1x4x288xf32> to vector<4x288xf32>
    %c4 = arith.constant 4 : index
    %c0_25 = arith.constant 0 : index
    %c0_26 = arith.constant 0 : index
    %27 = vector.load %arg2[%c4, %c0_25, %c0_26] : memref<9x2x4xf32, #tpu.memory_space<vmem>>, vector<1x2x4xf32>
    %28 = vector.shape_cast %27 : vector<1x2x4xf32> to vector<2x4xf32>
    %cst_27 = arith.constant dense<0.000000e+00> : vector<2x288xf32>
    %29 = tpu.matmul %28, %26, %cst_27 {dimension_numbers = #tpu.dot_dimension_numbers<[1], [0], [0], [1], [0, 0, 1, 1], [], []>} : vector<2x4xf32>, vector<4x288xf32>, vector<2x288xf32> -> vector<2x288xf32>
    %30 = arith.addf %24, %29 : vector<2x288xf32>
    %c0_28 = arith.constant 0 : index
    %c0_29 = arith.constant 0 : index
    %c20 = arith.constant 20 : index
    %31 = vector.load %arg1[%c0_28, %c0_29, %c20] : memref<1x4x342xf32, #tpu.memory_space<vmem>>, vector<1x4x288xf32>
    %32 = vector.shape_cast %31 : vector<1x4x288xf32> to vector<4x288xf32>
    %c5 = arith.constant 5 : index
    %c0_30 = arith.constant 0 : index
    %c0_31 = arith.constant 0 : index
    %33 = vector.load %arg2[%c5, %c0_30, %c0_31] : memref<9x2x4xf32, #tpu.memory_space<vmem>>, vector<1x2x4xf32>
    %34 = vector.shape_cast %33 : vector<1x2x4xf32> to vector<2x4xf32>
    %cst_32 = arith.constant dense<0.000000e+00> : vector<2x288xf32>
    %35 = tpu.matmul %34, %32, %cst_32 {dimension_numbers = #tpu.dot_dimension_numbers<[1], [0], [0], [1], [0, 0, 1, 1], [], []>} : vector<2x4xf32>, vector<4x288xf32>, vector<2x288xf32> -> vector<2x288xf32>
    %36 = arith.addf %30, %35 : vector<2x288xf32>
    %c0_33 = arith.constant 0 : index
    %c0_34 = arith.constant 0 : index
    %c36 = arith.constant 36 : index
    %37 = vector.load %arg1[%c0_33, %c0_34, %c36] : memref<1x4x342xf32, #tpu.memory_space<vmem>>, vector<1x4x288xf32>
    %38 = vector.shape_cast %37 : vector<1x4x288xf32> to vector<4x288xf32>
    %c6 = arith.constant 6 : index
    %c0_35 = arith.constant 0 : index
    %c0_36 = arith.constant 0 : index
    %39 = vector.load %arg2[%c6, %c0_35, %c0_36] : memref<9x2x4xf32, #tpu.memory_space<vmem>>, vector<1x2x4xf32>
    %40 = vector.shape_cast %39 : vector<1x2x4xf32> to vector<2x4xf32>
    %cst_37 = arith.constant dense<0.000000e+00> : vector<2x288xf32>
    %41 = tpu.matmul %40, %38, %cst_37 {dimension_numbers = #tpu.dot_dimension_numbers<[1], [0], [0], [1], [0, 0, 1, 1], [], []>} : vector<2x4xf32>, vector<4x288xf32>, vector<2x288xf32> -> vector<2x288xf32>
    %42 = arith.addf %36, %41 : vector<2x288xf32>
    %c0_38 = arith.constant 0 : index
    %c0_39 = arith.constant 0 : index
    %c37 = arith.constant 37 : index
    %43 = vector.load %arg1[%c0_38, %c0_39, %c37] : memref<1x4x342xf32, #tpu.memory_space<vmem>>, vector<1x4x288xf32>
    %44 = vector.shape_cast %43 : vector<1x4x288xf32> to vector<4x288xf32>
    %c7 = arith.constant 7 : index
    %c0_40 = arith.constant 0 : index
    %c0_41 = arith.constant 0 : index
    %45 = vector.load %arg2[%c7, %c0_40, %c0_41] : memref<9x2x4xf32, #tpu.memory_space<vmem>>, vector<1x2x4xf32>
    %46 = vector.shape_cast %45 : vector<1x2x4xf32> to vector<2x4xf32>
    %cst_42 = arith.constant dense<0.000000e+00> : vector<2x288xf32>
    %47 = tpu.matmul %46, %44, %cst_42 {dimension_numbers = #tpu.dot_dimension_numbers<[1], [0], [0], [1], [0, 0, 1, 1], [], []>} : vector<2x4xf32>, vector<4x288xf32>, vector<2x288xf32> -> vector<2x288xf32>
    %48 = arith.addf %42, %47 : vector<2x288xf32>
    %c0_43 = arith.constant 0 : index
    %c0_44 = arith.constant 0 : index
    %c38 = arith.constant 38 : index
    %49 = vector.load %arg1[%c0_43, %c0_44, %c38] : memref<1x4x342xf32, #tpu.memory_space<vmem>>, vector<1x4x288xf32>
    %50 = vector.shape_cast %49 : vector<1x4x288xf32> to vector<4x288xf32>
    %c8 = arith.constant 8 : index
    %c0_45 = arith.constant 0 : index
    %c0_46 = arith.constant 0 : index
    %51 = vector.load %arg2[%c8, %c0_45, %c0_46] : memref<9x2x4xf32, #tpu.memory_space<vmem>>, vector<1x2x4xf32>
    %52 = vector.shape_cast %51 : vector<1x2x4xf32> to vector<2x4xf32>
    %cst_47 = arith.constant dense<0.000000e+00> : vector<2x288xf32>
    %53 = tpu.matmul %52, %50, %cst_47 {dimension_numbers = #tpu.dot_dimension_numbers<[1], [0], [0], [1], [0, 0, 1, 1], [], []>} : vector<2x4xf32>, vector<4x288xf32>, vector<2x288xf32> -> vector<2x288xf32>
    %54 = arith.addf %48, %53 : vector<2x288xf32>
    %c0_48 = arith.constant 0 : index
    %c0_49 = arith.constant 0 : index
    %55 = vector.load %arg3[%c0_48, %c0_49] : memref<2x1xf32, #tpu.memory_space<vmem>>, vector<2x1xf32>
    %56 = vector.broadcast %55 : vector<2x1xf32> to vector<2x288xf32>
    %57 = arith.addf %54, %56 : vector<2x288xf32>
    %c0_50 = arith.constant 0 : index
    %c0_51 = arith.constant 0 : index
    %c0_52 = arith.constant 0 : index
    %58 = vector.load %arg4[%c0_50, %c0_51, %c0_52] : memref<1x2x288xf32, #tpu.memory_space<vmem>>, vector<1x2x288xf32>
    %59 = vector.shape_cast %58 : vector<1x2x288xf32> to vector<2x288xf32>
    %60 = vector.shape_cast %57 : vector<2x288xf32> to vector<1x2x288xf32>
    tpu.vector_store %arg4[%c0_50, %c0_51, %c0_52], %60 {strides = array<i32>} : memref<1x2x288xf32, #tpu.memory_space<vmem>>, vector<1x2x288xf32>,
    return
  }
  func.func @transform_0(%arg0: i32) -> (i32, i32, i32) {
    %c0_i32 = arith.constant 0 : i32
    %c0_i32_0 = arith.constant 0 : i32
    %c0_i32_1 = arith.constant 0 : i32
    return %arg0, %c0_i32, %c0_i32_0 : i32, i32, i32
  }
  func.func @transform_1(%arg0: i32) -> (i32, i32, i32) {
    %c0_i32 = arith.constant 0 : i32
    %c0_i32_0 = arith.constant 0 : i32
    %c0_i32_1 = arith.constant 0 : i32
    %c0_i32_2 = arith.constant 0 : i32
    return %c0_i32, %c0_i32_0, %c0_i32_1 : i32, i32, i32
  }
  func.func @transform_2(%arg0: i32) -> (i32, i32) {
    %c0_i32 = arith.constant 0 : i32
    %c0_i32_0 = arith.constant 0 : i32
    %c0_i32_1 = arith.constant 0 : i32
    return %c0_i32, %c0_i32_0 : i32, i32
  }
  func.func @transform_3(%arg0: i32) -> (i32, i32, i32) {
    %c0_i32 = arith.constant 0 : i32
    %c0_i32_0 = arith.constant 0 : i32
    %c0_i32_1 = arith.constant 0 : i32
    return %arg0, %c0_i32, %c0_i32_0 : i32, i32, i32
  }
}

</mosaic_0001>

<bundles_post_ra>
// kernel: tpu_custom_call.1
= control target key start
LH: loop header
LB: loop body
LE: loop exit
PB: predicated region body
PF: predicated region fallthrough
CT: control target
= control target key end

     0   :  { %8 = vsyncpa [#allocation3], 0  ;;  %s2322_s0 = inlined_call_operand.vmem [shape: f32[2,4,342], index: 0, kind: input, shape index: {}]   ;;  %s2323_s1 = inlined_call_operand.vmem [shape: f32[9,2,4], index: 1, kind: input, shape index: {}]   ;;  %s2324_s2 = inlined_call_operand.vmem [shape: f32[2,1], index: 2, kind: input, shape index: {}]   ;;  %s2325_s3 = inlined_call_operand.hbm [shape: f32[2,2,288], index: 3, kind: output, shape index: {}]  }
   0x1   :  { %10 = vsyncpa [#allocation3 + $0x1], 0  ;;  %s2073_s12 = smov 0   ;;  %s2075_s13 = smov 0  }
   0x2   :  { %s2077_s14 = smov 0   ;;  %s2079_s15 = smov 0  }
   0x3 LB: > { %s2094_s16 = sadd.s32 4294967295, %s2038_s15   ;;  %s1780_s17 = sadd.s32 4294967294, %s2038_s15   ;;  %s2038_s15 = sphi %s2079_s15, %s2331_s15   ;;  %s2034_s14 = sphi %s2077_s14, %s2330_s14   ;;  %s2030_s13 = sphi %s2075_s13, %s2329_s13   ;;  %s2026_s12 = sphi %s2073_s12, %s2328_s12  }
   0x4   : > { %s2098_s18 = sadd.s32 1, %s2038_s15   ;;  %s91_s19 = sadd.s32 1, %s2034_s14 }
   0x5   : > { %s88_s20 = ssub.s32 %s2038_s15, %s2098_s18  ;;  %p101_p0 = scmp.ne.s32.totalorder %s2034_s14, %s2030_s13 }
   0x6   : > { %p89_p1 = scmp.eq.s32.totalorder %s88_s20, 0  ;;  %p102_p2 = scmp.eq.s32.totalorder %s2094_s16, 1 }
   0x7   : > { %p107_p3 = scmp.ne.s32.totalorder %s2030_s13, %s2026_s12  ;;  %p108_p4 = scmp.eq.s32.totalorder %s1780_s17, 1 }
   0x8   : > { %s2109_s21 = scalar_select %p89_p1, %s2034_s14, %s91_s19  }
   0x9   : > { %p2111_p5 = por %p102_p2, %p101_p0  ;;  %p2115_p6 = por %p108_p4, %p107_p3 }
   0xa   : > { %p1783_p7 = scmp.ge.s32.totalorder %s2038_s15, 1  ;;  %p140_p8 = scmp.lt.s32.totalorder %s2038_s15, 3 }
   0xc   : > { %p141_p9 = pnand %p1783_p7, %p140_p8 }
   0xd   : > { %p164_p10 = scmp.lt.s32.totalorder (!%p141_p9), %s2094_s16, 1  ;;  %v2040_v0 = vmov (!%p141_p9), 0.0   ;;  %vm2041_vm0 = vmmov (!%p141_p9), 0   ;;  %s2042_s29 = smov (!%p141_p9), 127   ;;  %v1671_v11 = vld [vmem:[%s2324_s2] sm:$0x3] (!%p141_p9) }
   0xe   : > { %144 = sbr.rel (%p141_p9) target bundleno = 450 (0x1c2), region = 32  ;;  %1859 = vmatprep.subr.mxu1 (!%p141_p9), %v2040_v0  ;;  %261 = vmatprep.mubr.f32.mxu0 (!%p141_p9), %v2040_v0  ;;  %s2043_s30 = smov (!%p141_p9), 126   ;;  %v2050_v12 = vmov (!%p141_p9), 0   ;;  %vm190_vm1 = vcmask (!%p141_p9), 1043456   ;;  %vm183_vm2 = vcmask (!%p141_p9), 1039360   ;;  %vm186_vm3 = vcmask (!%p141_p9), 31744  }
   0xf   : > { %1861 = vmatprep.mubr.msk.f32.mxu1 (!%p141_p9), %vm2041_vm0, %v2040_v0  ;;  %s2044_s4 = smov (!%p141_p9), 110   ;;  %s2045_s5 = smov (!%p141_p9), 109   ;;  %1974 = vset.pattern.permute.xlu0 (!%p141_p9), %v2050_v12  ;;  %v1785_v18 = vld [vmem:[%s2323_s1 + $0x2] sm:$0x3] (!%p141_p9)  ;;  %vm501_vm4 = vcmask (!%p141_p9), 1031168   ;;  %vm670_vm5 = vcmask (!%p141_p9), 900096  }
  0x10   : > { %s2046_s6 = smov (!%p141_p9), 108   ;;  %s2047_s7 = smov (!%p141_p9), 92   ;;  %v171_v24 = vld [vmem:[%s2323_s1] sm:$0x3] (!%p141_p9)  ;;  %v1796_v29 = vld [vmem:[%s2323_s1 + $0x4] sm:$0x3] (!%p141_p9) }
  0x11   : > { %s2048_s8 = smov (!%p141_p9), 91   ;;  %s2049_s9 = smov (!%p141_p9), 90   ;;  %v1802_v32 = vld [vmem:[%s2323_s1 + $0x6] sm:$0x3] (!%p141_p9)  ;;  %vm839_vm6 = vcmask (!%p141_p9), 891904   ;;  %vm1008_vm7 = vcmask (!%p141_p9), 883712  }
  0x12   : > { %v1808_v34 = vld [vmem:[%s2323_s1 + $0x8] sm:$0x3] (!%p141_p9)  ;;  %v1814_v39 = vld [vmem:[%s2323_s1 + $0xa] sm:$0x3] (!%p141_p9)  ;;  %v1820_v46 = vld [vmem:[%s2323_s1 + $0xc] sm:$0x3] (!%p141_p9) }
  0x13   : > { %vm1177_vm8 = vcmask (!%p141_p9), 752640   ;;  %v1826_v49 = vld [vmem:[%s2323_s1 + $0xe] sm:$0x3] (!%p141_p9)  ;;  %v1832_v53 = vld [vmem:[%s2323_s1 + $0x10] sm:$0x3] (!%p141_p9)  ;;  %vm1346_vm9 = vcmask (!%p141_p9), 744448  }
  0x14   : > { %vm1515_vm10 = vcmask (!%p141_p9), 736256   ;;  %s161_s17 = sand.u32 (!%p141_p9), 1, %s2030_s13   ;;  %vm1700_vm11 = vcmask (!%p141_p9), 1041408   ;;  %vm1701_vm12 = vcmask (!%p141_p9), 1043458   ;;  %vm1703_vm14 = vcmask (!%p141_p9), 259076   ;;  %s1922_s20 = smul.u32 (!%p141_p9), 96, %s2094_s16 }
  0x15   : > { %s165_s24 = scalar_select %p164_p10, %s2094_s16, 1  ;;  %vm1702_vm13 = vmor %vm1701_vm12, %vm1700_vm11 }
  0x16   : > { %s1920_s19 = smul.u32 6, %s161_s17  ;;  %vm1704_vm15 = vmor %vm1703_vm14, %vm1702_vm13  ;;  %s2052_s16 = smov [#allocation2]  }
  0x17   : > { %s1921_s25 = smul.u32 12, %s165_s24 }
  0x18   : > { %s163_s24 = scalar_lea.vmem [#allocation2], %s1920_s19 }
  0x19   : > { %s2128_s28 = scalar_lea.vmem %s2322_s0, %s1921_s25  ;;  %s1721_s25 = sshll.u32 %s163_s24, 4  ;;  %s2282_s25 = int_to_ptr.vmem [resolvable:$true] %s1721_s25 }
  0x1a   : > { %v2133_v1 = vld [vmem:[%s2128_s28] sm:$0xff]  ;;  %v2139_v3 = vld [vmem:[%s2128_s28 + $0x8] sm:$0xf] }
  0x1b   : > { %177 = vrot.lane.b32.xlu1 %v2133_v1, %s2042_s29  ;;  %v176_v2 = vcombine.high %v2133_v1, %v2133_v1  ;;  %v489_v4 = vld [vmem:[%s2128_s28 + $0x8] sm:$0xf] }
  0x1c   : > { %v658_v5 = vld [vmem:[%s2128_s28 + $0x8] sm:$0xf] }
  0x1d   : > { %179 = vrot.lane.b32.xlu0 %v176_v2, %s2042_s29  ;;  %v827_v6 = vld [vmem:[%s2128_s28 + $0x8] sm:$0xf] }
  0x1e   : > { %v996_v7 = vld [vmem:[%s2128_s28 + $0x8] sm:$0xf] }
  0x1f   : > { %497 = vrot.lane.b32.xlu1 %v176_v2, %s2043_s30  ;;  %v1165_v8 = vld [vmem:[%s2128_s28 + $0x8] sm:$0xf] }
  0x20   : > { %v1334_v9 = vld [vmem:[%s2128_s28 + $0x8] sm:$0xf] }
  0x21   : > { %181 = vrot.lane.b32.xlu0 %v2139_v3, %s2042_s29  ;;  %v1503_v10 = vld [vmem:[%s2128_s28 + $0x8] sm:$0xf]  ;;  %s2280_s28 = scalar_lea.hbm %s2325_s3, %s1922_s20  ;;  %s1707_s29 = scalar_lea.sflag [#allocation3], %s161_s17 }
  0x23   : > { %495 = vrot.lane.b32.xlu1 %v2133_v1, %s2043_s30 }
  0x25   : > { %499 = vrot.lane.b32.xlu0 %v489_v4, %s2043_s30  ;;  %s1976_s30 = scalar_lea.vmem %s2282_s25, 96 }
  0x26   : > { %p1977_p11 = scmp.ne.s32.totalorder %s2282_s25, %s1976_s30 }
  0x27   : > { %668 = vrot.lane.b32.xlu1 %v658_v5, %s2044_s4 }
  0x28   : > { %p1978_p12 = pnand %p1977_p11, %p2111_p5 }
  0x29   : > { %666 = vrot.lane.b32.xlu0 %v176_v2, %s2044_s4 }
  0x2a   : > { %p1979_p13 = pneg %p1978_p12 }
  0x2b   : > { %835 = vrot.lane.b32.xlu1 %v176_v2, %s2045_s5 }
  0x2d   : > { %664 = vrot.lane.b32.xlu0 %v2133_v1, %s2044_s4  ;;  %s1980_s4 = sshll.u32 %s2052_s16, 4  ;;  %s1981_s4 = int_to_ptr.vmem [resolvable:$false] %s1980_s4 }
  0x2e   : > { %p1983_p0 = scmp.lt.s32.totalorder %s2282_s25, %s1981_s4 }
  0x2f   : > { %833 = vrot.lane.b32.xlu1 %v2133_v1, %s2045_s5 }
  0x31   : > { %837 = vrot.lane.b32.xlu0 %v827_v6, %s2045_s5  ;;  %s1982_s5 = scalar_lea.vmem %s1981_s4, 192 }
  0x32   : > { %p1984_p1 = scmp.lt.s32.totalorder %s1982_s5, %s1976_s30 }
  0x33   : > { %1006 = vrot.lane.b32.xlu1 %v996_v7, %s2046_s6 }
  0x34   : > { %p1985_p2 = por %p1984_p1, %p1983_p0 }
  0x35   : > { %1004 = vrot.lane.b32.xlu0 %v176_v2, %s2046_s6 }
  0x36   : > { %p1986_p3 = pnand %p1985_p2, %p1979_p13 }
  0x37   : > { %1173 = vrot.lane.b32.xlu1 %v176_v2, %s2047_s7 }
  0x39   : > { %1002 = vrot.lane.b32.xlu0 %v2133_v1, %s2046_s6 }
  0x3b   : > { %1171 = vrot.lane.b32.xlu1 %v2133_v1, %s2047_s7 }
  0x3d   : > { %1175 = vrot.lane.b32.xlu0 %v1165_v8, %s2047_s7 }
  0x3f   : > { %1344 = vrot.lane.b32.xlu1 %v1334_v9, %s2048_s8 }
  0x41   : > { %1342 = vrot.lane.b32.xlu0 %v176_v2, %s2048_s8 }
  0x43   : > { %1511 = vrot.lane.b32.xlu1 %v176_v2, %s2049_s9 }
  0x45   : > { %1340 = vrot.lane.b32.xlu0 %v2133_v1, %s2048_s8 }
  0x47   : > { %1509 = vrot.lane.b32.xlu1 %v2133_v1, %s2049_s9 }
  0x49   : > { %1513 = vrot.lane.b32.xlu0 %v1503_v10, %s2049_s9 }
  0x4d   : > { %1674 = vperm.xlu0 %1974, %v1671_v11  }
  0x8d   : > { %v178_v13 = vpop.permute.xlu1 %177 }
  0x8f   : > { %v180_v14 = vpop.permute.xlu0 %179 }
  0x90   : > { %v184_v19 = vsel %vm183_vm2, %v178_v13, %v180_v14 }
  0x91   : > { %v498_v15 = vpop.permute.xlu1 %497 }
  0x93   : > { %v182_v16 = vpop.permute.xlu0 %181 }
  0x94   : > { %1860 = vmatpush3.msk.msra.mxu1 %vm190_vm1, %v182_v16  ;;  %v185_v17 = vsel %vm183_vm2, %v180_v14, %v182_v16 }
  0x95   : > { %1786 = vmatprep.subr.msk.mxu0 %vm190_vm1, %v185_v17  ;;  %v496_v20 = vpop.permute.xlu1 %495  ;;  %1862 = vmatmul.mubr.msk.f32.vlgmr.msra.gmra.mrb[0].mxu1 %vm186_vm3, %v1785_v18 }
  0x96   : > { %1787 = vmatpush1.msk.msra.mxu0 %vm190_vm1, %v184_v19  ;;  %1864 = vmatprep.subr.mxu1 %v2040_v0  ;;  %v502_v26 = vsel %vm501_vm4, %v496_v20, %v498_v15 }
  0x97   : > { %1788 = vmatmul.mubr.msk.f32.vlgmr.msra.gmra.mrb[0].mxu0 %vm186_vm3, %v1785_v18  ;;  %1791 = vmatprep.subr.msk.mxu0 %vm190_vm1, %v176_v2  ;;  %v500_v21 = vpop.permute.xlu0 %499 }
  0x98   : > { %1792 = vmatpush1.msk.msra.mxu0 %vm190_vm1, %v2133_v1  ;;  %v503_v22 = vsel %vm501_vm4, %v498_v15, %v500_v21  ;;  %1865 = vmatpush3.msk.msra.mxu1 %vm190_vm1, %v2139_v3 }
  0x99   : > { %1797 = vmatprep.subr.msk.mxu0 %vm190_vm1, %v503_v22  ;;  %1866 = vmatprep.mubr.msk.f32.mxu1 %vm2041_vm0, %v2040_v0  ;;  %v669_v23 = vpop.permute.xlu1 %668 }
  0x9a   : > { %1869 = vmatprep.subr.mxu1 %v2040_v0  ;;  %411 = vmatprep.mubr.f32.mxu0 %v2040_v0 }
  0x9b   : > { %1867 = vmatmul.mubr.msk.f32.vlgmr.msra.gmra.mrb[2].mxu1 %vm186_vm3, %v171_v24  ;;  %v667_v25 = vpop.permute.xlu0 %666 }
  0x9c   : > { %1870 = vmatpush3.msk.msra.mxu1 %vm190_vm1, %v500_v21  ;;  %1871 = vmatprep.mubr.msk.f32.mxu1 %vm2041_vm0, %v2040_v0  ;;  %v672_v28 = vsel %vm670_vm5, %v667_v25, %v669_v23 }
  0x9d   : > { %1874 = vmatprep.subr.mxu1 %v2040_v0  ;;  %v836_v27 = vpop.permute.xlu1 %835 }
  0x9f   : > { %1793 = vmatmul.mubr.msk.f32.vlgmr.msra.gmra.mrb[0].mxu0 %vm186_vm3, %v171_v24  ;;  %v665_v30 = vpop.permute.xlu0 %664  ;;  %1872 = vmatmul.mubr.msk.f32.vlgmr.msra.gmra.mrb[4].mxu1 %vm186_vm3, %v1796_v29  ;;  %v2051_v24 = vmov 1983009808  }
  0xa0   : > { %1798 = vmatpush1.msk.msra.mxu0 %vm190_vm1, %v502_v26  ;;  %577 = vmatprep.mubr.f32.mxu0 %v2040_v0  ;;  %v671_v35 = vsel %vm670_vm5, %v665_v30, %v667_v25  ;;  %v1685_v25 = vunpack.c.l.s4 %v2051_v24  ;;  %v1687_v26 = vlaneseq }
  0xa1   : > { %1803 = vmatprep.subr.msk.mxu0 %vm190_vm1, %v672_v28  ;;  %1875 = vmatpush3.msk.msra.mxu1 %vm190_vm1, %v669_v23  ;;  %v834_v31 = vpop.permute.xlu1 %833 }
  0xa2   : > { %1876 = vmatprep.mubr.msk.f32.mxu1 %vm2041_vm0, %v2040_v0  ;;  %1879 = vmatprep.subr.mxu1 %v2040_v0  ;;  %v840_v42 = vsel %vm839_vm6, %v834_v31, %v836_v27  ;;  %v1688_v28 = vshrl.u32 %v1687_v26, 7 }
  0xa3   : > { %v838_v33 = vpop.permute.xlu0 %837  ;;  %1877 = vmatmul.mubr.msk.f32.vlgmr.msra.gmra.mrb[6].mxu1 %vm186_vm3, %v1802_v32 }
  0xa4   : > { %1880 = vmatpush3.msk.msra.mxu1 %vm190_vm1, %v838_v33  ;;  %1881 = vmatprep.mubr.msk.f32.mxu1 %vm2041_vm0, %v2040_v0  ;;  %v841_v37 = vsel %vm839_vm6, %v836_v27, %v838_v33  ;;  %v1686_v27 = vunpack.c.0.s8 %v1685_v25 }
  0xa5   : > { %v1007_v36 = vpop.permute.xlu1 %1006  ;;  %1884 = vmatprep.subr.mxu1 %v2040_v0 }
  0xa6   : > { %v1689_v33 = vsub.s32 %v1686_v27, %v1688_v28 }
  0xa7   : > { %1799 = vmatmul.mubr.msk.f32.vlgmr.msra.gmra.mrb[0].mxu0 %vm186_vm3, %v1796_v29  ;;  %v1005_v38 = vpop.permute.xlu0 %1004  ;;  %1882 = vmatmul.mubr.msk.f32.vlgmr.msra.gmra.mrb[8].mxu1 %vm186_vm3, %v1808_v34 }
  0xa8   : > { %1804 = vmatpush1.msk.msra.mxu0 %vm190_vm1, %v671_v35  ;;  %746 = vmatprep.mubr.f32.mxu0 %v2040_v0  ;;  %v1010_v44 = vsel %vm1008_vm7, %v1005_v38, %v1007_v36 }
  0xa9   : > { %1809 = vmatprep.subr.msk.mxu0 %vm190_vm1, %v841_v37  ;;  %v1174_v40 = vpop.permute.xlu1 %1173  ;;  %1885 = vmatpush3.msk.msra.mxu1 %vm190_vm1, %v1007_v36 }
  0xaa   : > { %1886 = vmatprep.mubr.msk.f32.mxu1 %vm2041_vm0, %v2040_v0  ;;  %1889 = vmatprep.subr.mxu1 %v2040_v0 }
  0xab   : > { %v1003_v41 = vpop.permute.xlu0 %1002  ;;  %1887 = vmatmul.mubr.msk.f32.vlgmr.msra.gmra.mrb[10].mxu1 %vm186_vm3, %v1814_v39 }
  0xac   : > { %1891 = vmatprep.mubr.msk.f32.mxu1 %vm2041_vm0, %v2040_v0  ;;  %v1009_v50 = vsel %vm1008_vm7, %v1003_v41, %v1005_v38 }
  0xad   : > { %v1172_v43 = vpop.permute.xlu1 %1171 }
  0xae   : > { %v1178_v55 = vsel %vm1177_vm8, %v1172_v43, %v1174_v40 }
  0xaf   : > { %1805 = vmatmul.mubr.msk.f32.vlgmr.msra.gmra.mrb[0].mxu0 %vm186_vm3, %v1802_v32  ;;  %v1176_v45 = vpop.permute.xlu0 %1175 }
  0xb0   : > { %1810 = vmatpush1.msk.msra.mxu0 %vm190_vm1, %v840_v42  ;;  %915 = vmatprep.mubr.f32.mxu0 %v2040_v0  ;;  %v1179_v51 = vsel %vm1177_vm8, %v1174_v40, %v1176_v45 }
  0xb1   : > { %1815 = vmatprep.subr.msk.mxu0 %vm190_vm1, %v1010_v44  ;;  %1890 = vmatpush3.msk.msra.mxu1 %vm190_vm1, %v1176_v45  ;;  %v1345_v47 = vpop.permute.xlu1 %1344 }
  0xb2   : > { %1892 = vmatmul.mubr.msk.f32.vlgmr.msra.gmra.mrb[12].mxu1 %vm186_vm3, %v1820_v46  ;;  %1894 = vmatprep.subr.mxu1 %v2040_v0 }
  0xb3   : > { %v1343_v48 = vpop.permute.xlu0 %1342  ;;  %1895 = vmatpush3.msk.msra.mxu1 %vm190_vm1, %v1345_v47  ;;  %1896 = vmatprep.mubr.msk.f32.mxu1 %vm2041_vm0, %v2040_v0 }
  0xb4   : > { %1899 = vmatprep.subr.mxu1 %v2040_v0  ;;  %v1348_v56 = vsel %vm1346_vm9, %v1343_v48, %v1345_v47 }
  0xb5   : > { %v1512_v57 = vpop.permute.xlu1 %1511 }
  0xb6   : > { %1897 = vmatmul.mubr.msk.f32.vlgmr.msra.gmra.mrb[14].mxu1 %vm186_vm3, %v1826_v49 }
  0xb7   : > { %1811 = vmatmul.mubr.msk.f32.vlgmr.msra.gmra.mrb[0].mxu0 %vm186_vm3, %v1808_v34  ;;  %v1341_v52 = vpop.permute.xlu0 %1340  ;;  %1901 = vmatprep.mubr.msk.f32.mxu1 %vm2041_vm0, %v2040_v0 }
  0xb8   : > { %1816 = vmatpush1.msk.msra.mxu0 %vm190_vm1, %v1009_v50  ;;  %1084 = vmatprep.mubr.f32.mxu0 %v2040_v0  ;;  %v1347_v58 = vsel %vm1346_vm9, %v1341_v52, %v1343_v48 }
  0xb9   : > { %1821 = vmatprep.subr.msk.mxu0 %vm190_vm1, %v1179_v51  ;;  %v1510_v60 = vpop.permute.xlu1 %1509 }
  0xba   : > { %v1516_v61 = vsel %vm1515_vm10, %v1510_v60, %v1512_v57 }
  0xbb   : > { %v1514_v54 = vpop.permute.xlu0 %1513 }
  0xbc   : > { %1900 = vmatpush3.msk.msra.mxu1 %vm190_vm1, %v1514_v54  ;;  %v1517_v59 = vsel %vm1515_vm10, %v1512_v57, %v1514_v54 }
  0xbd   : > { %1902 = vmatmul.mubr.msk.f32.vlgmr.msra.gmra.mrb[16].mxu1 %vm186_vm3, %v1832_v53 }
  0xbf   : > { %1817 = vmatmul.mubr.msk.f32.vlgmr.msra.gmra.mrb[0].mxu0 %vm186_vm3, %v1814_v39 }
  0xc0   : > { %1822 = vmatpush1.msk.msra.mxu0 %vm190_vm1, %v1178_v55  ;;  %1253 = vmatprep.mubr.f32.mxu0 %v2040_v0 }
  0xc1   : > { %1827 = vmatprep.subr.msk.mxu0 %vm190_vm1, %v1348_v56 }
  0xc7   : > { %1823 = vmatmul.mubr.msk.f32.vlgmr.msra.gmra.mrb[0].mxu0 %vm186_vm3, %v1820_v46 }
  0xc8   : > { %1828 = vmatpush1.msk.msra.mxu0 %vm190_vm1, %v1347_v58  ;;  %1422 = vmatprep.mubr.f32.mxu0 %v2040_v0 }
  0xc9   : > { %1833 = vmatprep.subr.msk.mxu0 %vm190_vm1, %v1517_v59 }
  0xcc   : > { %v1675_v29 = vpop.permute.xlu0 %1674 }
  0xcf   : > { %1829 = vmatmul.mubr.msk.f32.vlgmr.msra.gmra.mrb[0].mxu0 %vm186_vm3, %v1826_v49 }
  0xd0   : > { %1834 = vmatpush1.msk.msra.mxu0 %vm190_vm1, %v1516_v61  ;;  %1591 = vmatprep.mubr.f32.mxu0 %v2040_v0 }
  0xd7   : > { %1835 = vmatmul.mubr.msk.f32.vlgmr.msra.gmra.mrb[0].mxu0 %vm186_vm3, %v1832_v53 }
 0x168   : > { %v334_v62 = vpop.f32.mrb[0].mxu1 }
 0x169   : > { %v1863_v63 = vpop.f32.mrb[1].mxu1 }
 0x16e   : > { %v484_v1 = vpop.f32.mrb[2].mxu1 }
 0x16f   : > { %v485_v2 = vadd.f32 %v484_v1, %v334_v62  ;;  %v1868_v3 = vpop.f32.mrb[3].mxu1 }
 0x172   : > { %v650_v4 = vpop.f32.mrb[4].mxu1 }
 0x173   : > { %v656_v5 = vadd.f32 %v650_v4, %v485_v2  ;;  %v1873_v6 = vpop.f32.mrb[5].mxu1 }
 0x176   : > { %v819_v7 = vpop.f32.mrb[6].mxu1 }
 0x177   : > { %v825_v8 = vadd.f32 %v819_v7, %v656_v5  ;;  %v1878_v9 = vpop.f32.mrb[7].mxu1 }
 0x17a   : > { %v988_v10 = vpop.f32.mrb[8].mxu1 }
 0x17b   : > { %v994_v11 = vadd.f32 %v988_v10, %v825_v8  ;;  %v1883_v12 = vpop.f32.mrb[9].mxu1 }
 0x17e   : > { %v1157_v13 = vpop.f32.mrb[10].mxu1 }
 0x17f   : > { %v1163_v14 = vadd.f32 %v1157_v13, %v994_v11  ;;  %v1888_v0 = vpop.f32.mrb[11].mxu1 }
 0x185   : > { %v1326_v15 = vpop.f32.mrb[12].mxu1 }
 0x186   : > { %v1332_v16 = vadd.f32 %v1326_v15, %v1163_v14  ;;  %v1893_v17 = vpop.f32.mrb[13].mxu1 }
 0x189   : > { %v1495_v18 = vpop.f32.mrb[14].mxu1 }
 0x18a   : > { %v1501_v19 = vadd.f32 %v1495_v18, %v1332_v16  ;;  %v1898_v20 = vpop.f32.mrb[15].mxu1 }
 0x190   : > { %v1664_v21 = vpop.f32.mrb[16].mxu1 }
 0x191   : > { %v1670_v22 = vadd.f32 %v1664_v21, %v1501_v19  ;;  %v1903_v23 = vpop.f32.mrb[17].mxu1 }
 0x193   : > { %v1679_v34 = vadd.f32 %v1675_v29, %v1670_v22 }
 0x195   : > { %v1697_v37 = vrot.slane %v1679_v34, %v1689_v33 }
 0x1aa   : > { %v1593_v30 = vpop.f32.mrb[0].mxu0 }
 0x1ab   : > { %v1677_v31 = vadd.f32 %v1675_v29, %v1593_v30  ;;  %v1595_v32 = vpop.f32.mrb[1].mxu0 }
 0x1ac   : > { %v1678_v35 = vadd.f32 %v1675_v29, %v1595_v32 }
 0x1ae   : > { %v1683_v36 = vcombine.low %v1677_v31, %v1678_v35 }
 0x1b0   : > { %v1690_v38 = vrot.slane %v1683_v36, %v1689_v33 }
 0x1b2   : > { %v1698_v39 = vcombine.low %v1690_v38, %v1697_v37 }
 0x1b4   : > { %1705 = vst.msk [vmem:[%s163_s24] sm:$0x3f] %vm1704_vm15, %v1698_v39 }
 0x1b5   : > { %1989 = shalt.err (!%p1986_p3)
}
 0x1b6   : > { %s1990_s6 = scalar_lea.hbm %s2280_s28, 96  ;;  %s1994_s9 = scalar_lea.hbm %s2325_s3, 192 }
 0x1b7   : > { %p1991_p4 = scmp.ne.s32.totalorder %s2280_s28, %s1990_s6  ;;  %p1995_p9 = scmp.lt.u32.totalorder %s2280_s28, %s2325_s3 }
 0x1b8   : > { %p1996_p10 = scmp.lt.u32.totalorder %s1994_s9, %s1990_s6  ;;  %p1998_p12 = scmp.lt.u32.totalorder %s1990_s6, %s2280_s28 }
 0x1b9   : > { %p1992_p7 = pnand %p1991_p4, %p2111_p5 }
 0x1ba   : > { %p1997_p11 = por %p1996_p10, %p1995_p9 }
 0x1bb   : > { %p1993_p8 = pneg %p1992_p7 }
 0x1bc   : > { %p1999_p13 = por %p1998_p12, %p1997_p11 }
 0x1be   : > { %p2000_p0 = pnand %p1999_p13, %p1993_p8 }
 0x1c0   : > { %2003 = shalt.err (!%p2000_p0)
}
 0x1c1   : > { %1923 = dma.vmem_to_hbm [thread:$0]  (%p2111_p5), %s2282_s25, 96, %s2280_s28, %s1707_s29  }
 0x1c2 PF: > { %p1929_p1 = scmp.ge.s32.totalorder %s2038_s15, 2  ;;  %s1733_s17 = sand.u32 1, %s2026_s12  }
 0x1c3   : > { %s1734_s19 = scalar_lea.sflag [#allocation3], %s1733_s17 }
 0x1c4   : > { %p1926_p2 = pnand %p1929_p1, %p2115_p6 }
 0x1c6   : > { %2021 = dma.done.wait (!%p1926_p2), %s1734_s19, 96  }
 0x1c7   : > { %2023 = vsyncadd (!%p1926_p2), %s1734_s19, 4294967200  ;;  %p13_p3 = scmp.ge.s32.totalorder %s2098_s18, 4   ;;  %s2328_s12 = smov %s2030_s13 }
 0x1c8   : > { %s2329_s13 = smov %s2034_s14  ;;  %s2330_s14 = smov %s2109_s21 }
 0x1c9   : > { %s2331_s15 = smov %s2098_s18  ;;  %15 = sbr.rel (!%p13_p3) target bundleno = 3 (0x3), region = 75 }
 0x1d0   :  { %1739 = vsyncpa [#allocation3], 1 }
 0x1d1   :  { %1741 = vsyncpa [#allocation3 + $0x1], 1 }

</bundles_post_ra>
